<compile_context>
chip_gen: v7x
topology: tpu7x:2x2x1
jax: 0.10.0
libtpu: 0.0.40
codegen_flags: <defaults>
</compile_context>

<pallas_src>
import functools

import jax
import jax.numpy as jnp
from jax.experimental import pallas as pl
from jax.experimental.pallas import tpu as pltpu


def _round_up(x, m):
    return ((x + m - 1) // m) * m


def _iou_partial_kernel(pred_ref, true_ref, inter_ref, sq_ref,
                        inter_acc, sq_acc, *, total_l, tile_l, mask_last):
    """Accumulate per-row sum(t*p) and sum(t*t + p*p) over the L axis.

    Grid = (S, NB, NK): L superblocks (parallel), B row blocks (parallel),
    L tiles per superblock (arbitrary / reduction, innermost).  The (TB, 128)
    f32 scratch accumulators stay VMEM-resident across NK; outputs are written
    once, at the last NK step, with a single cross-lane reduction each.
    """
    s = pl.program_id(0)
    k = pl.program_id(2)
    nk = pl.num_programs(2)

    @pl.when(k == 0)
    def _init():
        inter_acc[...] = jnp.zeros_like(inter_acc)
        sq_acc[...] = jnp.zeros_like(sq_acc)

    tb = pred_ref.shape[0]

    if tile_l % 128 == 0:
        if mask_last:
            # Global column index of each lane in this tile (hoisted).
            base = (s * nk + k) * tile_l
            col = base + jax.lax.broadcasted_iota(jnp.int32, (tb, 128), 1)
        pi = None
        si = None
        for j in range(tile_l // 128):          # pure VPU; static unroll
            lo, hi = j * 128, (j + 1) * 128
            p = pred_ref[:, lo:hi].astype(jnp.float32)
            t = true_ref[:, lo:hi].astype(jnp.float32)
            prod = t * p
            ssq = t * t + p * p
            if mask_last:
                valid = col < (total_l - lo)     # col + lo < total_l
                prod = jnp.where(valid, prod, 0.0)
                ssq = jnp.where(valid, ssq, 0.0)
            pi = prod if pi is None else pi + prod
            si = ssq if si is None else si + ssq
        inter_acc[...] += pi
        sq_acc[...] += si
    else:
        # Narrow case: TL == L < 128 (single L tile, nothing to mask).
        p = pred_ref[...].astype(jnp.float32)
        t = true_ref[...].astype(jnp.float32)
        inter_acc[:, :tile_l] += t * p
        sq_acc[:, :tile_l] += t * t + p * p

    @pl.when(k == nk - 1)
    def _finalize():
        inter_ref[...] = jnp.sum(inter_acc[...], axis=-1, keepdims=True)
        sq_ref[...] = jnp.sum(sq_acc[...], axis=-1, keepdims=True)


def iou_loss(y_pred, y_true, epsilon=1e-6, *, max_tile_elems=1 << 20):
    """y_pred, y_true: (N, C, H, W). Returns scalar 1 - mean(IoU) as f32."""
    assert y_pred.shape == y_true.shape
    N, C, H, W = y_pred.shape
    B, L = N * C, H * W

    pred2d = y_pred.reshape(B, L)     # native dtype, no padding, no copies
    true2d = y_true.reshape(B, L)

    itemsize = jnp.dtype(pred2d.dtype).itemsize
    sub = max(8, 32 // itemsize)      # sublane multiple: 8 f32 / 16 bf16 / 32 int8

    # --- TL: prefer full (contiguous) rows; otherwise a multiple of 128 <= L.
    if L <= 128:
        TL = L                                              # block == full dim
    else:
        max_tl = max(128, min(8192, (max_tile_elems // sub) // 128 * 128))
        TL = min((L // 128) * 128, max_tl)
    mask_last = (L % TL) != 0          # partial trailing L tile -> mask in-kernel

    # --- TB: fill the VMEM budget, keep >= 4 row blocks when B allows.
    if B < sub:
        TB = B                                              # block == full dim
    else:
        budget_tb = max(sub, (max_tile_elems // TL) // sub * sub)
        TB = max(sub, min(budget_tb,
                          _round_up(-(-B // 4), sub),       # aim for >= 4 blocks
                          (B // sub) * sub,                 # block <= dim
                          2048))
    NB = -(-B // TB)
    NT = -(-L // TL)

    # --- S: leading parallel L-split so both v7x TensorCores get work even
    #     when NB is small; per-split partials are summed in the epilogue.
    if NB >= 4 or NT == 1:
        S = 1
    else:
        need = -(-4 // NB)
        divisors = [d for d in range(1, NT + 1) if NT % d == 0]
        at_least = [d for d in divisors if d >= need]
        S = at_least[0] if at_least else divisors[-1]
    NK = NT // S

    grid = (S, NB, NK)

    kernel = functools.partial(_iou_partial_kernel,
                               total_l=L, tile_l=TL, mask_last=mask_last)

    def in_index(s, i, k):
        return (i, s * NK + k)

    def out_index(s, i, k):
        return (s, i, 0)

    # 2 inputs x double buffer + scratch/temp headroom; fits every generation
    # (v7x has 64 MiB per-TC VMEM, v5e/v6e have 128 MiB physical).
    tile_bytes = TB * TL * itemsize
    vmem_limit = int(min(4 * tile_bytes + 10 * TB * 128 * 4 + (8 << 20),
                         48 << 20))

    inter_parts, sq_parts = pl.pallas_call(
        kernel,
        out_shape=(
            jax.ShapeDtypeStruct((S, B, 1), jnp.float32),
            jax.ShapeDtypeStruct((S, B, 1), jnp.float32),
        ),
        grid=grid,
        in_specs=[
            pl.BlockSpec((TB, TL), in_index),
            pl.BlockSpec((TB, TL), in_index),
        ],
        out_specs=(
            pl.BlockSpec((None, TB, 1), out_index),
            pl.BlockSpec((None, TB, 1), out_index),
        ),
        scratch_shapes=[
            pltpu.VMEM((TB, 128), jnp.float32),
            pltpu.VMEM((TB, 128), jnp.float32),
        ],
        compiler_params=pltpu.CompilerParams(
            dimension_semantics=("parallel", "parallel", "arbitrary"),
            vmem_limit_bytes=vmem_limit),
        cost_estimate=pl.CostEstimate(
            flops=6 * B * L,
            transcendentals=0,
            bytes_accessed=2 * B * L * itemsize + 2 * S * B * 4),
    )(pred2d, true2d)

    # Tiny epilogue on (S, B) partials in plain JAX.
    inter = jnp.sum(inter_parts[:, :, 0], axis=0)            # (B,)
    sq = jnp.sum(sq_parts[:, :, 0], axis=0)                  # (B,)
    union = sq - inter
    iou = (inter + epsilon) / (union + epsilon)
    return (1.0 - jnp.mean(iou)).astype(jnp.float32)


def _reference(y_pred, y_true, epsilon=1e-6):
    y_pred = y_pred.astype(jnp.float32)
    y_true = y_true.astype(jnp.float32)
    inter = (y_true * y_pred).sum((-2, -1))
    union = (y_true ** 2).sum((-2, -1)) + (y_pred ** 2).sum((-2, -1)) - inter
    iou = (inter + epsilon) / (union + epsilon)
    return 1.0 - jnp.mean(iou)


if __name__ == "__main__":
    key = jax.random.PRNGKey(0)

    cases = [
        ((2, 4, 16, 16), {}),                          # single tile
        ((2, 4, 48, 48), {}),                          # full contiguous rows
        ((2, 4, 60, 60), {}),                          # masked last L tile + L superblock split
        ((4, 8, 60, 60), dict(max_tile_elems=2048)),   # multi-step reduction + mask
    ]
    for idx, (shape, kw) in enumerate(cases):
        key, k1, k2 = jax.random.split(key, 3)
        y_pred = jax.nn.sigmoid(jax.random.normal(k1, shape, jnp.float32))
        y_true = jax.nn.sigmoid(jax.random.normal(k2, shape, jnp.float32))
        loss = iou_loss(y_pred, y_true, **kw)
        jax.block_until_ready(loss)
        ref = _reference(y_pred, y_true)
        assert jnp.allclose(loss, ref, atol=1e-5, rtol=1e-5), (idx, loss, ref)

    print("KERNEL_OK")
</pallas_src>

<mosaic_0001>
module attributes {stable_mosaic.version = 11 : i64} {
  func.func @_iou_partial_kernel(%arg0: i32, %arg1: i32, %arg2: i32, %arg3: memref<8x256xf32, #tpu.memory_space<vmem>>, %arg4: memref<8x256xf32, #tpu.memory_space<vmem>>, %arg5: memref<1x8x1xf32, #tpu.memory_space<vmem>>, %arg6: memref<1x8x1xf32, #tpu.memory_space<vmem>>, %arg7: memref<8x128xf32, #tpu.memory_space<vmem>>, %arg8: memref<8x128xf32, #tpu.memory_space<vmem>>) attributes {dimension_semantics = [#tpu.dimension_semantics<parallel>, #tpu.dimension_semantics<parallel>, #tpu.dimension_semantics<arbitrary>], iteration_bounds = array<i64: 1, 1, 1>, scalar_prefetch = 0 : i64, scratch_operands = 2 : i64, tpu.core_type = #tpu.core_type<tc>, window_params = [{transform_indices = @transform_0, window_bounds = array<i64: 8, 256>}, {transform_indices = @transform_1, window_bounds = array<i64: 8, 256>}, {transform_indices = @transform_2, window_bounds = array<i64: 1, 8, 1>}, {transform_indices = @transform_3, window_bounds = array<i64: 1, 8, 1>}]} {
    %c0_i32 = arith.constant 0 : i32
    %0 = arith.cmpi eq, %arg2, %c0_i32 : i32
    %1 = arith.extui %0 : i1 to i32
    %c0_i32_0 = arith.constant 0 : i32
    %2 = arith.cmpi ne, %1, %c0_i32_0 : i32
    scf.if %2 {
      %cst = arith.constant 0.000000e+00 : f32
      %26 = vector.broadcast %cst : f32 to vector<8x128xf32>
      %c0_17 = arith.constant 0 : index
      %c0_18 = arith.constant 0 : index
      %27 = vector.load %arg7[%c0_17, %c0_18] : memref<8x128xf32, #tpu.memory_space<vmem>>, vector<8x128xf32>
      tpu.vector_store %arg7[%c0_17, %c0_18], %26 {strides = array<i32>} : memref<8x128xf32, #tpu.memory_space<vmem>>, vector<8x128xf32>,
      %cst_19 = arith.constant 0.000000e+00 : f32
      %28 = vector.broadcast %cst_19 : f32 to vector<8x128xf32>
      %c0_20 = arith.constant 0 : index
      %c0_21 = arith.constant 0 : index
      %29 = vector.load %arg8[%c0_20, %c0_21] : memref<8x128xf32, #tpu.memory_space<vmem>>, vector<8x128xf32>
      tpu.vector_store %arg8[%c0_20, %c0_21], %28 {strides = array<i32>} : memref<8x128xf32, #tpu.memory_space<vmem>>, vector<8x128xf32>,
    } else {
    }
    %c0 = arith.constant 0 : index
    %c0_1 = arith.constant 0 : index
    %3 = vector.load %arg3[%c0, %c0_1] : memref<8x256xf32, #tpu.memory_space<vmem>>, vector<8x128xf32>
    %c0_2 = arith.constant 0 : index
    %c0_3 = arith.constant 0 : index
    %4 = vector.load %arg4[%c0_2, %c0_3] : memref<8x256xf32, #tpu.memory_space<vmem>>, vector<8x128xf32>
    %5 = arith.mulf %4, %3 : vector<8x128xf32>
    %6 = arith.mulf %4, %4 : vector<8x128xf32>
    %7 = arith.mulf %3, %3 : vector<8x128xf32>
    %8 = arith.addf %6, %7 : vector<8x128xf32>
    %c0_4 = arith.constant 0 : index
    %c128 = arith.constant 128 : index
    %9 = vector.load %arg3[%c0_4, %c128] : memref<8x256xf32, #tpu.memory_space<vmem>>, vector<8x128xf32>
    %c0_5 = arith.constant 0 : index
    %c128_6 = arith.constant 128 : index
    %10 = vector.load %arg4[%c0_5, %c128_6] : memref<8x256xf32, #tpu.memory_space<vmem>>, vector<8x128xf32>
    %11 = arith.mulf %10, %9 : vector<8x128xf32>
    %12 = arith.mulf %10, %10 : vector<8x128xf32>
    %13 = arith.mulf %9, %9 : vector<8x128xf32>
    %14 = arith.addf %12, %13 : vector<8x128xf32>
    %15 = arith.addf %5, %11 : vector<8x128xf32>
    %16 = arith.addf %8, %14 : vector<8x128xf32>
    %c0_7 = arith.constant 0 : index
    %c0_8 = arith.constant 0 : index
    %17 = vector.load %arg7[%c0_7, %c0_8] : memref<8x128xf32, #tpu.memory_space<vmem>>, vector<8x128xf32>
    %18 = arith.addf %17, %15 : vector<8x128xf32>
    %c0_9 = arith.constant 0 : index
    %c0_10 = arith.constant 0 : index
    %19 = vector.load %arg7[%c0_9, %c0_10] : memref<8x128xf32, #tpu.memory_space<vmem>>, vector<8x128xf32>
    tpu.vector_store %arg7[%c0_9, %c0_10], %18 {strides = array<i32>} : memref<8x128xf32, #tpu.memory_space<vmem>>, vector<8x128xf32>,
    %c0_11 = arith.constant 0 : index
    %c0_12 = arith.constant 0 : index
    %20 = vector.load %arg8[%c0_11, %c0_12] : memref<8x128xf32, #tpu.memory_space<vmem>>, vector<8x128xf32>
    %21 = arith.addf %20, %16 : vector<8x128xf32>
    %c0_13 = arith.constant 0 : index
    %c0_14 = arith.constant 0 : index
    %22 = vector.load %arg8[%c0_13, %c0_14] : memref<8x128xf32, #tpu.memory_space<vmem>>, vector<8x128xf32>
    tpu.vector_store %arg8[%c0_13, %c0_14], %21 {strides = array<i32>} : memref<8x128xf32, #tpu.memory_space<vmem>>, vector<8x128xf32>,
    %c0_i32_15 = arith.constant 0 : i32
    %23 = arith.cmpi eq, %arg2, %c0_i32_15 : i32
    %24 = arith.extui %23 : i1 to i32
    %c0_i32_16 = arith.constant 0 : i32
    %25 = arith.cmpi ne, %24, %c0_i32_16 : i32
    scf.if %25 {
      %c0_17 = arith.constant 0 : index
      %c0_18 = arith.constant 0 : index
      %26 = vector.load %arg7[%c0_17, %c0_18] : memref<8x128xf32, #tpu.memory_space<vmem>>, vector<8x128xf32>
      %cst = arith.constant dense<0.000000e+00> : vector<8xf32>
      %27 = vector.multi_reduction <add>, %26, %cst [1] : vector<8x128xf32> to vector<8xf32>
      %28 = vector.shape_cast %27 : vector<8xf32> to vector<8x1xf32>
      %c0_19 = arith.constant 0 : index
      %c0_20 = arith.constant 0 : index
      %c0_21 = arith.constant 0 : index
      %29 = vector.load %arg5[%c0_19, %c0_20, %c0_21] : memref<1x8x1xf32, #tpu.memory_space<vmem>>, vector<1x8x1xf32>
      %30 = vector.shape_cast %29 : vector<1x8x1xf32> to vector<8x1xf32>
      %31 = vector.shape_cast %28 : vector<8x1xf32> to vector<1x8x1xf32>
      tpu.vector_store %arg5[%c0_19, %c0_20, %c0_21], %31 {strides = array<i32>} : memref<1x8x1xf32, #tpu.memory_space<vmem>>, vector<1x8x1xf32>,
      %c0_22 = arith.constant 0 : index
      %c0_23 = arith.constant 0 : index
      %32 = vector.load %arg8[%c0_22, %c0_23] : memref<8x128xf32, #tpu.memory_space<vmem>>, vector<8x128xf32>
      %cst_24 = arith.constant dense<0.000000e+00> : vector<8xf32>
      %33 = vector.multi_reduction <add>, %32, %cst_24 [1] : vector<8x128xf32> to vector<8xf32>
      %34 = vector.shape_cast %33 : vector<8xf32> to vector<8x1xf32>
      %c0_25 = arith.constant 0 : index
      %c0_26 = arith.constant 0 : index
      %c0_27 = arith.constant 0 : index
      %35 = vector.load %arg6[%c0_25, %c0_26, %c0_27] : memref<1x8x1xf32, #tpu.memory_space<vmem>>, vector<1x8x1xf32>
      %36 = vector.shape_cast %35 : vector<1x8x1xf32> to vector<8x1xf32>
      %37 = vector.shape_cast %34 : vector<8x1xf32> to vector<1x8x1xf32>
      tpu.vector_store %arg6[%c0_25, %c0_26, %c0_27], %37 {strides = array<i32>} : memref<1x8x1xf32, #tpu.memory_space<vmem>>, vector<1x8x1xf32>,
    } else {
    }
    return
  }
  func.func @transform_0(%arg0: i32, %arg1: i32, %arg2: i32) -> (i32, i32) {
    %c1_i32 = arith.constant 1 : i32
    %0 = arith.muli %arg0, %c1_i32 : i32
    %1 = arith.addi %0, %arg2 : i32
    %c0_i32 = arith.constant 0 : i32
    return %arg1, %1 : i32, i32
  }
  func.func @transform_1(%arg0: i32, %arg1: i32, %arg2: i32) -> (i32, i32) {
    %c1_i32 = arith.constant 1 : i32
    %0 = arith.muli %arg0, %c1_i32 : i32
    %1 = arith.addi %0, %arg2 : i32
    %c0_i32 = arith.constant 0 : i32
    return %arg1, %1 : i32, i32
  }
  func.func @transform_2(%arg0: i32, %arg1: i32, %arg2: i32) -> (i32, i32, i32) {
    %c0_i32 = arith.constant 0 : i32
    %c0_i32_0 = arith.constant 0 : i32
    return %arg0, %arg1, %c0_i32 : i32, i32, i32
  }
  func.func @transform_3(%arg0: i32, %arg1: i32, %arg2: i32) -> (i32, i32, i32) {
    %c0_i32 = arith.constant 0 : i32
    %c0_i32_0 = arith.constant 0 : i32
    return %arg0, %arg1, %c0_i32 : i32, i32, i32
  }
}

</mosaic_0001>

<bundles_post_ra>
// kernel: tpu_custom_call.1
= control target key start
LH: loop header
LB: loop body
LE: loop exit
PB: predicated region body
PF: predicated region fallthrough
CT: control target
= control target key end

     0   :  { %9 = vsyncpa [#allocation5], 0  ;;  %s199_s0 = inlined_call_operand.hbm [shape: f32[8,256], index: 0, kind: input, shape index: {}]   ;;  %s200_s1 = inlined_call_operand.hbm [shape: f32[8,256], index: 1, kind: input, shape index: {}]   ;;  %s201_s2 = inlined_call_operand.vmem [shape: f32[1,8,1], index: 2, kind: output, shape index: {0}]   ;;  %s202_s3 = inlined_call_operand.vmem [shape: f32[1,8,1], index: 3, kind: output, shape index: {1}]  }
   0x1   :  { %10 = vsyncpa [#allocation7], 0  ;;  %s147_s12 = smov [#allocation4]   ;;  %s148_s14 = smov [#allocation6]  }
   0x2   :  { %s21_s13 = sshll.u32 %s147_s12, 4  ;;  %s35_s15 = sshll.u32 %s148_s14, 4  ;;  %s22_s13 = int_to_ptr.vmem [resolvable:$true] %s21_s13  ;;  %s36_s15 = int_to_ptr.vmem [resolvable:$true] %s35_s15 }
   0x3   :  { %s99_s18 = scalar_lea.hbm %s199_s0, 256 }
   0x4   :  { %p100_p0 = scmp.ne.s32.totalorder %s199_s0, %s99_s18  ;;  %p103_p1 = scmp.lt.u32.totalorder %s99_s18, %s199_s0 }
   0x6   :  { %p105_p2 = pnand %p103_p1, %p100_p0 }
   0x8   :  { %108 = shalt.err (!%p105_p2)
}
   0x9   :  { %s109_s23 = scalar_lea.vmem %s22_s13, 256  ;;  %p114_p4 = scmp.lt.s32.totalorder %s22_s13, %s22_s13 }
   0xa   :  { %p110_p3 = scmp.ne.s32.totalorder %s22_s13, %s109_s23  ;;  %p115_p5 = scmp.lt.s32.totalorder %s109_s23, %s109_s23 }
   0xc   :  { %p116_p6 = por %p115_p5, %p114_p4 }
   0xe   :  { %p117_p7 = pnand %p116_p6, %p110_p3 }
  0x10   :  { %120 = shalt.err (!%p117_p7)
}
  0x11   :  { %24 = dma.hbm_to_vmem [thread:$0]  %s199_s0, 256, %s22_s13, [#allocation5]  }
  0x12   :  { %s121_s28 = scalar_lea.hbm %s200_s1, 256 }
  0x13   :  { %p122_p8 = scmp.ne.s32.totalorder %s200_s1, %s121_s28  ;;  %p125_p9 = scmp.lt.u32.totalorder %s121_s28, %s200_s1 }
  0x15   :  { %p127_p10 = pnand %p125_p9, %p122_p8 }
  0x17   :  { %130 = shalt.err (!%p127_p10)
}
  0x18   :  { %s131_s6 = scalar_lea.vmem %s36_s15, 256  ;;  %p136_p12 = scmp.lt.s32.totalorder %s36_s15, %s36_s15 }
  0x19   :  { %p132_p11 = scmp.ne.s32.totalorder %s36_s15, %s131_s6  ;;  %p137_p13 = scmp.lt.s32.totalorder %s131_s6, %s131_s6 }
  0x1b   :  { %p138_p0 = por %p137_p13, %p136_p12 }
  0x1d   :  { %p139_p1 = pnand %p138_p0, %p132_p11 }
  0x1f   :  { %142 = shalt.err (!%p139_p1)
}
  0x20   :  { %38 = dma.hbm_to_vmem [thread:$0]  %s200_s1, 256, %s36_s15, [#allocation7]  }
  0x21   :  { %143 = dma.done.wait [#allocation5], 256  }
  0x22   :  { %144 = vsyncadd [#allocation5], 4294967040 }
  0x23   :  { %145 = dma.done.wait [#allocation7], 256  }
  0x24   :  { %146 = vsyncadd [#allocation7], 4294967040  ;;  %v55_v0 = vld [vmem:[#allocation4] sm:$0xff]  ;;  %v56_v1 = vld [vmem:[#allocation6] sm:$0xff]  ;;  %vm81_vm0 = vcmask 7168  }
  0x25   :  { %v61_v2 = vld [vmem:[#allocation4 + $0x8] sm:$0xff]  ;;  %v57_v3 = vmul.f32 %v56_v1, %v55_v0  ;;  %v58_v4 = vmul.f32 %v56_v1, %v56_v1  ;;  %v59_v5 = vmul.f32 %v55_v0, %v55_v0  ;;  %v62_v6 = vld [vmem:[#allocation6 + $0x8] sm:$0xff] }
  0x26   :  { %v65_v7 = vmul.f32 %v61_v2, %v61_v2  ;;  %v63_v8 = vmul.f32 %v62_v6, %v61_v2  ;;  %v64_v9 = vmul.f32 %v62_v6, %v62_v6 }
  0x27   :  { %v60_v10 = vadd.f32 %v59_v5, %v58_v4 }
  0x28   :  { %v67_v11 = vadd.f32 %v63_v8, %v57_v3  ;;  %v66_v12 = vadd.f32 %v65_v7, %v64_v9 }
  0x2a   :  { %79 = vadd.xlane.f32.xlu0 %v67_v11  ;;  %v68_v13 = vadd.f32 %v66_v12, %v60_v10 }
  0x2e   :  { %84 = vadd.xlane.f32.xlu0 %v68_v13 }
  0xb7   :  { %v80_v14 = vpop.xlane.xlu0 %79 }
  0xb8   :  { %82 = vst.msk [vmem:[%s201_s2] sm:$0xff] %vm81_vm0, %v80_v14 }
  0xbb   :  { %v85_v15 = vpop.xlane.xlu0 %84 }
  0xbc   :  { %86 = vst.msk [vmem:[%s202_s3] sm:$0xff] %vm81_vm0, %v85_v15 }
  0xbd   :  { %95 = vsyncpa [#allocation5], 1 }
  0xbe   :  { %96 = vsyncpa [#allocation7], 1 }

</bundles_post_ra>
